<compile_context>
chip_gen: v5e
topology: v5e:2x2
jax: 0.10.0
libtpu: 0.0.40
codegen_flags: <defaults>
</compile_context>

<pallas_src>
import jax
import jax.numpy as jnp
from jax import lax
from jax.experimental import pallas as pl
from jax.experimental.pallas import tpu as pltpu

# ---- model hyper-params (small, consistent with the module ctor) ----
D_MODEL = 32
NHEAD = 4
HEAD_DIM = D_MODEL // NHEAD
DIM_FF = 64
L_Q = 8      # src_1 sequence length
L_KV = 8     # src_2 sequence length
BATCH = 2
EPS = 1e-5
SCALE = 1.0 / (HEAD_DIM ** 0.5)

ROWS_Q = L_Q * BATCH     # 16 merged query rows, ordering l*N + n
ROWS_KV = L_KV * BATCH   # 16 merged key/value rows, ordering l*N + n

# lane offsets inside the packed (E, 512) weight slab — every sub-weight
# starts on a 128-lane boundary so slices load in the vreg-natural layout.
_OFF_WQ = 0          # Wq^T * SCALE   (32 cols)
_OFF_WKV = 128       # [Wk^T | Wv^T]  (64 cols, fused K/V projection)
_OFF_WO = 256        # Wo^T           (32 cols)
_OFF_W1 = 384        # W1^T           (64 cols)
_WA_LANES = 512

# row-block ids inside the pre-broadcast (9*ROWS_Q, 64) bias/LN slab
_R_BQ, _R_BKV, _R_BO, _R_B1, _R_B2, _R_G1, _R_BE1, _R_G2, _R_BE2 = range(9)


def _gelu_exact(x):
    # F.gelu default (approximate='none'): 0.5*x*(1+erf(x/sqrt(2)))
    return 0.5 * x * (1.0 + lax.erf(x * 0.7071067811865476))


def _layernorm(x, gamma, beta):
    mu = jnp.mean(x, axis=-1, keepdims=True)
    xc = x - mu
    var = jnp.mean(xc * xc, axis=-1, keepdims=True)
    inv = lax.rsqrt(var + EPS)
    return xc * inv * gamma + beta


def encoder_layer_kernel(x_ref, a_ref, wa_ref, w2t_ref, p_ref, out_ref):
    f32 = jnp.float32
    x = x_ref[...]          # (ROWS_Q, E)   merged batch, row = l*N + n
    a = a_ref[...]          # (ROWS_KV, E)

    # packed, pre-transposed, lane-aligned weights (no in-kernel .T anywhere)
    wq_t = wa_ref[:, _OFF_WQ:_OFF_WQ + D_MODEL]        # (E, E), pre-scaled
    wkv_t = wa_ref[:, _OFF_WKV:_OFF_WKV + 2 * D_MODEL]  # (E, 2E)
    wo_t = wa_ref[:, _OFF_WO:_OFF_WO + D_MODEL]        # (E, E)
    w1_t = wa_ref[:, _OFF_W1:_OFF_W1 + DIM_FF]         # (E, FF)
    w2_t = w2t_ref[...]                                # (FF, E)

    def pblk(r, width=D_MODEL):
        # pre-broadcast (ROWS_Q, width) parameter block — plain static slice
        return p_ref[r * ROWS_Q:(r + 1) * ROWS_Q, 0:width]

    bq = pblk(_R_BQ)                    # already scaled by SCALE
    bkv = pblk(_R_BKV, 2 * D_MODEL)
    bo = pblk(_R_BO)
    b1 = pblk(_R_B1, DIM_FF)
    b2 = pblk(_R_B2)
    g1 = pblk(_R_G1)
    be1 = pblk(_R_BE1)
    g2 = pblk(_R_G2)
    be2 = pblk(_R_BE2)

    # in-projections on the merged batch (bias + scale folded at pack time)
    q = jnp.dot(x, wq_t, preferred_element_type=f32) + bq      # (16, E)
    kv = jnp.dot(a, wkv_t, preferred_element_type=f32) + bkv   # (16, 2E)

    # per-head scores, stacked along sublanes for one shared softmax
    s_list = []
    for h in range(NHEAD):
        lo = h * HEAD_DIM
        qh = q[:, lo:lo + HEAD_DIM]                    # (16, Hd)
        kh = kv[:, lo:lo + HEAD_DIM]                   # (16, Hd)
        # q @ k^T without materializing a transpose
        s_list.append(lax.dot_general(qh, kh, (((1,), (1,)), ((), ())),
                                      preferred_element_type=f32))   # (16, 16)
    s = jnp.concatenate(s_list, axis=0)                # (NHEAD*16, 16)

    # cross-batch mask: batch(row) = row % N (valid on the stacked axis because
    # ROWS_Q = L_Q*N is a multiple of N).  Masked entries -> -1e30 -> exp -> 0.
    ri = lax.broadcasted_iota(jnp.int32, (NHEAD * ROWS_Q, ROWS_KV), 0)
    ci = lax.broadcasted_iota(jnp.int32, (NHEAD * ROWS_Q, ROWS_KV), 1)
    s = jnp.where((ri % BATCH) == (ci % BATCH), s, jnp.float32(-1e30))

    # shared softmax: ONE max / exp / sum / reciprocal for all heads
    s = s - jnp.max(s, axis=-1, keepdims=True)
    pr = jnp.exp(s)
    pr = pr * pl.reciprocal(jnp.sum(pr, axis=-1, keepdims=True), approx=True)

    # per-head context; head concat folded into the Wo projection accumulation
    attn = bo
    for h in range(NHEAD):
        lo = h * HEAD_DIM
        ph = pr[h * ROWS_Q:(h + 1) * ROWS_Q, :]                     # (16, 16)
        vh = kv[:, D_MODEL + lo:D_MODEL + lo + HEAD_DIM]            # (16, Hd)
        oh = jnp.dot(ph, vh, preferred_element_type=f32)            # (16, Hd)
        attn = attn + jnp.dot(oh, wo_t[lo:lo + HEAD_DIM, :],
                              preferred_element_type=f32)           # (16, E)

    # residual + norm1   (dropout1 = identity in eval)
    y = _layernorm(x + attn, g1, be1)

    # feed-forward: linear1 -> gelu -> linear2 (dropouts = identity)
    h1 = _gelu_exact(jnp.dot(y, w1_t, preferred_element_type=f32) + b1)  # (16, FF)
    h2 = jnp.dot(h1, w2_t, preferred_element_type=f32) + b2              # (16, E)

    # residual + norm2
    out_ref[...] = _layernorm(y + h2, g2, be2)


def pack_params(p):
    """One-time host-side packing of the 16 parameter tensors into 3 slabs."""
    # (E, 512) lane-aligned weight slab; SCALE folded into Wq^T.
    wa = jnp.zeros((D_MODEL, _WA_LANES), jnp.float32)
    wa = wa.at[:, _OFF_WQ:_OFF_WQ + D_MODEL].set(p["wq"].T * SCALE)
    wa = wa.at[:, _OFF_WKV:_OFF_WKV + 2 * D_MODEL].set(
        jnp.concatenate([p["wk"].T, p["wv"].T], axis=1))
    wa = wa.at[:, _OFF_WO:_OFF_WO + D_MODEL].set(p["wo"].T)
    wa = wa.at[:, _OFF_W1:_OFF_W1 + DIM_FF].set(p["w1"].T)

    w2t = p["w2"].T                                                # (FF, E)

    def row_block(v):
        # pad to 64 lanes, pre-broadcast to the merged row count
        v = jnp.pad(v, ((0, 0), (0, 2 * D_MODEL - v.shape[1])))
        return jnp.broadcast_to(v, (ROWS_Q, 2 * D_MODEL))

    bias = jnp.concatenate([
        row_block(p["bq"] * SCALE),                            # block 0 (scaled)
        row_block(jnp.concatenate([p["bk"], p["bv"]], axis=1)),  # block 1 (fused KV)
        row_block(p["bo"]),                                    # block 2
        row_block(p["b1"]),                                    # block 3
        row_block(p["b2"]),                                    # block 4
        row_block(p["g1"]),                                    # block 5
        row_block(p["be1"]),                                   # block 6
        row_block(p["g2"]),                                    # block 7
        row_block(p["be2"]),                                   # block 8
    ], axis=0)                                                 # (9*ROWS_Q, 64)
    return {"wa": wa, "w2t": w2t, "bias": bias}


def transformer_encoder_layer(src_1, src_2, packed):
    """src_1: (L_Q, N, E), src_2: (L_KV, N, E) native layout. Returns (L_Q, N, E)."""
    Lq, N, E = src_1.shape
    Lkv = src_2.shape[0]
    wa, w2t, bias = packed["wa"], packed["w2t"], packed["bias"]

    # free contiguous flatten (no transpose): rows ordered l*N + n
    x2 = src_1.reshape(Lq * N, E)
    a2 = src_2.reshape(Lkv * N, E)

    def full_spec(shape):
        nd = len(shape)
        return pl.BlockSpec(shape, lambda i, _nd=nd: (0,) * _nd)

    out2 = pl.pallas_call(
        encoder_layer_kernel,
        out_shape=jax.ShapeDtypeStruct((Lq * N, E), jnp.float32),
        grid=(1,),                       # single step: whole batch in one go
        in_specs=[
            full_spec(x2.shape),         # src_1 rows
            full_spec(a2.shape),         # src_2 rows
            full_spec(wa.shape),         # packed lane-aligned weights
            full_spec(w2t.shape),        # W2^T
            full_spec(bias.shape),       # pre-broadcast biases / LN params
        ],
        out_specs=full_spec((Lq * N, E)),
        compiler_params=pltpu.CompilerParams(
            dimension_semantics=("arbitrary",)),
    )(x2, a2, wa, w2t, bias)

    return out2.reshape(Lq, N, E)        # free un-flatten back to native layout


# ---------------- pure-JAX reference (for sanity check) ----------------
def reference_forward(src_1, src_2, p):
    x = jnp.transpose(src_1, (1, 0, 2))   # (N, L, E)
    a = jnp.transpose(src_2, (1, 0, 2))

    def lin(t, w, b):
        return jnp.einsum("nld,fd->nlf", t, w) + b

    q = lin(x, p["wq"], p["bq"])
    k = lin(a, p["wk"], p["bk"])
    v = lin(a, p["wv"], p["bv"])

    def split(t, L):
        return t.reshape(t.shape[0], L, NHEAD, HEAD_DIM).transpose(0, 2, 1, 3)

    qh, kh, vh = split(q, L_Q), split(k, L_KV), split(v, L_KV)
    s = jnp.einsum("nhqd,nhkd->nhqk", qh * SCALE, kh)
    pattn = jax.nn.softmax(s, axis=-1)
    o = jnp.einsum("nhqk,nhkd->nhqd", pattn, vh)
    o = o.transpose(0, 2, 1, 3).reshape(x.shape[0], L_Q, D_MODEL)
    attn_out = lin(o, p["wo"], p["bo"])

    def ln(t, g, b):
        mu = t.mean(-1, keepdims=True)
        var = ((t - mu) ** 2).mean(-1, keepdims=True)
        return (t - mu) / jnp.sqrt(var + EPS) * g + b

    y = ln(x + attn_out, p["g1"], p["be1"])
    h = jax.nn.gelu(lin(y, p["w1"], p["b1"]), approximate=False)
    z = ln(y + lin(h, p["w2"], p["b2"]), p["g2"], p["be2"])
    return jnp.transpose(z, (1, 0, 2))


def make_params(key):
    ks = jax.random.split(key, 10)
    s = 0.05
    p = {
        "wq": jax.random.normal(ks[0], (D_MODEL, D_MODEL), jnp.float32) * s,
        "wk": jax.random.normal(ks[1], (D_MODEL, D_MODEL), jnp.float32) * s,
        "wv": jax.random.normal(ks[2], (D_MODEL, D_MODEL), jnp.float32) * s,
        "wo": jax.random.normal(ks[3], (D_MODEL, D_MODEL), jnp.float32) * s,
        "w1": jax.random.normal(ks[4], (DIM_FF, D_MODEL), jnp.float32) * s,
        "w2": jax.random.normal(ks[5], (D_MODEL, DIM_FF), jnp.float32) * s,
        "bq": jax.random.normal(ks[6], (1, D_MODEL), jnp.float32) * s,
        "bk": jax.random.normal(ks[7], (1, D_MODEL), jnp.float32) * s,
        "bv": jax.random.normal(ks[8], (1, D_MODEL), jnp.float32) * s,
        "bo": jnp.zeros((1, D_MODEL), jnp.float32),
        "b1": jax.random.normal(ks[9], (1, DIM_FF), jnp.float32) * s,
        "b2": jnp.zeros((1, D_MODEL), jnp.float32),
        "g1": jnp.ones((1, D_MODEL), jnp.float32),
        "be1": jnp.zeros((1, D_MODEL), jnp.float32),
        "g2": jnp.ones((1, D_MODEL), jnp.float32),
        "be2": jnp.zeros((1, D_MODEL), jnp.float32),
    }
    return p


if __name__ == "__main__":
    key = jax.random.PRNGKey(0)
    k1, k2, k3 = jax.random.split(key, 3)
    params = make_params(k3)
    packed = pack_params(params)   # one-time packing, not per-forward cost

    src_1 = jax.random.normal(k1, (L_Q, BATCH, D_MODEL), jnp.float32)
    src_2 = jax.random.normal(k2, (L_KV, BATCH, D_MODEL), jnp.float32)

    out = transformer_encoder_layer(src_1, src_2, packed)
    out = jax.block_until_ready(out)

    ref = reference_forward(src_1, src_2, params)
    assert out.shape == (L_Q, BATCH, D_MODEL)
    assert jnp.allclose(out, ref, atol=2e-3, rtol=2e-3), "mismatch vs reference"

    print("KERNEL_OK")
</pallas_src>

<mosaic_0001>
module attributes {stable_mosaic.version = 11 : i64} {
  func.func @encoder_layer_kernel(%arg0: i32, %arg1: memref<16x32xf32, #tpu.memory_space<vmem>>, %arg2: memref<16x32xf32, #tpu.memory_space<vmem>>, %arg3: memref<32x512xf32, #tpu.memory_space<vmem>>, %arg4: memref<64x32xf32, #tpu.memory_space<vmem>>, %arg5: memref<144x64xf32, #tpu.memory_space<vmem>>, %arg6: memref<16x32xf32, #tpu.memory_space<vmem>>) attributes {dimension_semantics = [#tpu.dimension_semantics<arbitrary>], iteration_bounds = array<i64: 1>, scalar_prefetch = 0 : i64, scratch_operands = 0 : i64, tpu.core_type = #tpu.core_type<tc>, window_params = [{pipeline_mode = #tpu.pipeline_mode<synchronous>, transform_indices = @transform_0, window_bounds = array<i64: 16, 32>}, {pipeline_mode = #tpu.pipeline_mode<synchronous>, transform_indices = @transform_1, window_bounds = array<i64: 16, 32>}, {pipeline_mode = #tpu.pipeline_mode<synchronous>, transform_indices = @transform_2, window_bounds = array<i64: 32, 512>}, {pipeline_mode = #tpu.pipeline_mode<synchronous>, transform_indices = @transform_3, window_bounds = array<i64: 64, 32>}, {pipeline_mode = #tpu.pipeline_mode<synchronous>, transform_indices = @transform_4, window_bounds = array<i64: 144, 64>}, {pipeline_mode = #tpu.pipeline_mode<synchronous>, transform_indices = @transform_5, window_bounds = array<i64: 16, 32>}]} {
    %c0 = arith.constant 0 : index
    %c0_0 = arith.constant 0 : index
    %0 = vector.load %arg1[%c0, %c0_0] : memref<16x32xf32, #tpu.memory_space<vmem>>, vector<16x32xf32>
    %c0_1 = arith.constant 0 : index
    %c0_2 = arith.constant 0 : index
    %1 = vector.load %arg2[%c0_1, %c0_2] : memref<16x32xf32, #tpu.memory_space<vmem>>, vector<16x32xf32>
    %c0_3 = arith.constant 0 : index
    %c0_4 = arith.constant 0 : index
    %2 = vector.load %arg3[%c0_3, %c0_4] : memref<32x512xf32, #tpu.memory_space<vmem>>, vector<32x32xf32>
    %c0_5 = arith.constant 0 : index
    %c128 = arith.constant 128 : index
    %3 = vector.load %arg3[%c0_5, %c128] : memref<32x512xf32, #tpu.memory_space<vmem>>, vector<32x64xf32>
    %c0_6 = arith.constant 0 : index
    %c256 = arith.constant 256 : index
    %4 = vector.load %arg3[%c0_6, %c256] : memref<32x512xf32, #tpu.memory_space<vmem>>, vector<32x32xf32>
    %c0_7 = arith.constant 0 : index
    %c384 = arith.constant 384 : index
    %5 = vector.load %arg3[%c0_7, %c384] : memref<32x512xf32, #tpu.memory_space<vmem>>, vector<32x64xf32>
    %c0_8 = arith.constant 0 : index
    %c0_9 = arith.constant 0 : index
    %6 = vector.load %arg4[%c0_8, %c0_9] : memref<64x32xf32, #tpu.memory_space<vmem>>, vector<64x32xf32>
    %c0_10 = arith.constant 0 : index
    %c0_11 = arith.constant 0 : index
    %7 = vector.load %arg5[%c0_10, %c0_11] : memref<144x64xf32, #tpu.memory_space<vmem>>, vector<16x32xf32>
    %c16 = arith.constant 16 : index
    %c0_12 = arith.constant 0 : index
    %8 = vector.load %arg5[%c16, %c0_12] : memref<144x64xf32, #tpu.memory_space<vmem>>, vector<16x64xf32>
    %c32 = arith.constant 32 : index
    %c0_13 = arith.constant 0 : index
    %9 = vector.load %arg5[%c32, %c0_13] : memref<144x64xf32, #tpu.memory_space<vmem>>, vector<16x32xf32>
    %c48 = arith.constant 48 : index
    %c0_14 = arith.constant 0 : index
    %10 = vector.load %arg5[%c48, %c0_14] : memref<144x64xf32, #tpu.memory_space<vmem>>, vector<16x64xf32>
    %c64 = arith.constant 64 : index
    %c0_15 = arith.constant 0 : index
    %11 = vector.load %arg5[%c64, %c0_15] : memref<144x64xf32, #tpu.memory_space<vmem>>, vector<16x32xf32>
    %c80 = arith.constant 80 : index
    %c0_16 = arith.constant 0 : index
    %12 = vector.load %arg5[%c80, %c0_16] : memref<144x64xf32, #tpu.memory_space<vmem>>, vector<16x32xf32>
    %c96 = arith.constant 96 : index
    %c0_17 = arith.constant 0 : index
    %13 = vector.load %arg5[%c96, %c0_17] : memref<144x64xf32, #tpu.memory_space<vmem>>, vector<16x32xf32>
    %c112 = arith.constant 112 : index
    %c0_18 = arith.constant 0 : index
    %14 = vector.load %arg5[%c112, %c0_18] : memref<144x64xf32, #tpu.memory_space<vmem>>, vector<16x32xf32>
    %c128_19 = arith.constant 128 : index
    %c0_20 = arith.constant 0 : index
    %15 = vector.load %arg5[%c128_19, %c0_20] : memref<144x64xf32, #tpu.memory_space<vmem>>, vector<16x32xf32>
    %cst = arith.constant dense<0.000000e+00> : vector<16x32xf32>
    %16 = tpu.matmul %0, %2, %cst {dimension_numbers = #tpu.dot_dimension_numbers<[1], [0], [0], [1], [0, 0, 1, 1], [], []>} : vector<16x32xf32>, vector<32x32xf32>, vector<16x32xf32> -> vector<16x32xf32>
    %17 = arith.addf %16, %7 : vector<16x32xf32>
    %cst_21 = arith.constant dense<0.000000e+00> : vector<16x64xf32>
    %18 = tpu.matmul %1, %3, %cst_21 {dimension_numbers = #tpu.dot_dimension_numbers<[1], [0], [0], [1], [0, 0, 1, 1], [], []>} : vector<16x32xf32>, vector<32x64xf32>, vector<16x64xf32> -> vector<16x64xf32>
    %19 = arith.addf %18, %8 : vector<16x64xf32>
    %20 = vector.extract_strided_slice %17 {offsets = [0, 0], sizes = [16, 8], strides = [1, 1]} : vector<16x32xf32> to vector<16x8xf32>
    %21 = vector.extract_strided_slice %19 {offsets = [0, 0], sizes = [16, 8], strides = [1, 1]} : vector<16x64xf32> to vector<16x8xf32>
    %cst_22 = arith.constant dense<0.000000e+00> : vector<16x16xf32>
    %22 = tpu.matmul %20, %21, %cst_22 {dimension_numbers = #tpu.dot_dimension_numbers<[1], [1], [0], [0], [0, 0, 1, 0], [], []>} : vector<16x8xf32>, vector<16x8xf32>, vector<16x16xf32> -> vector<16x16xf32>
    %23 = vector.extract_strided_slice %17 {offsets = [0, 8], sizes = [16, 8], strides = [1, 1]} : vector<16x32xf32> to vector<16x8xf32>
    %24 = vector.extract_strided_slice %19 {offsets = [0, 8], sizes = [16, 8], strides = [1, 1]} : vector<16x64xf32> to vector<16x8xf32>
    %cst_23 = arith.constant dense<0.000000e+00> : vector<16x16xf32>
    %25 = tpu.matmul %23, %24, %cst_23 {dimension_numbers = #tpu.dot_dimension_numbers<[1], [1], [0], [0], [0, 0, 1, 0], [], []>} : vector<16x8xf32>, vector<16x8xf32>, vector<16x16xf32> -> vector<16x16xf32>
    %26 = vector.extract_strided_slice %17 {offsets = [0, 16], sizes = [16, 8], strides = [1, 1]} : vector<16x32xf32> to vector<16x8xf32>
    %27 = vector.extract_strided_slice %19 {offsets = [0, 16], sizes = [16, 8], strides = [1, 1]} : vector<16x64xf32> to vector<16x8xf32>
    %cst_24 = arith.constant dense<0.000000e+00> : vector<16x16xf32>
    %28 = tpu.matmul %26, %27, %cst_24 {dimension_numbers = #tpu.dot_dimension_numbers<[1], [1], [0], [0], [0, 0, 1, 0], [], []>} : vector<16x8xf32>, vector<16x8xf32>, vector<16x16xf32> -> vector<16x16xf32>
    %29 = vector.extract_strided_slice %17 {offsets = [0, 24], sizes = [16, 8], strides = [1, 1]} : vector<16x32xf32> to vector<16x8xf32>
    %30 = vector.extract_strided_slice %19 {offsets = [0, 24], sizes = [16, 8], strides = [1, 1]} : vector<16x64xf32> to vector<16x8xf32>
    %cst_25 = arith.constant dense<0.000000e+00> : vector<16x16xf32>
    %31 = tpu.matmul %29, %30, %cst_25 {dimension_numbers = #tpu.dot_dimension_numbers<[1], [1], [0], [0], [0, 0, 1, 0], [], []>} : vector<16x8xf32>, vector<16x8xf32>, vector<16x16xf32> -> vector<16x16xf32>
    %32 = tpu.concatenate %22, %25, %28, %31 in 0 : vector<16x16xf32>, vector<16x16xf32>, vector<16x16xf32>, vector<16x16xf32> -> vector<64x16xf32>
    %33 = tpu.iota {dimensions = array<i32: 0>} : vector<64x16xi32>
    %34 = tpu.iota {dimensions = array<i32: 1>} : vector<64x16xi32>
    %c2_i32 = arith.constant 2 : i32
    %c0_i32 = arith.constant 0 : i32
    %35 = arith.cmpi eq, %c2_i32, %c0_i32 : i32
    %c1_i32 = arith.constant 1 : i32
    %36 = arith.select %35, %c1_i32, %c2_i32 : i32
    %37 = vector.broadcast %36 : i32 to vector<64x16xi32>
    %38 = arith.remsi %33, %37 : vector<64x16xi32>
    %c0_i32_26 = arith.constant 0 : i32
    %39 = vector.broadcast %c0_i32_26 : i32 to vector<64x16xi32>
    %40 = arith.cmpi ne, %38, %39 : vector<64x16xi32>
    %c0_i32_27 = arith.constant 0 : i32
    %41 = vector.broadcast %c0_i32_27 : i32 to vector<64x16xi32>
    %42 = arith.cmpi slt, %38, %41 : vector<64x16xi32>
    %c0_i32_28 = arith.constant 0 : i32
    %43 = arith.cmpi slt, %36, %c0_i32_28 : i32
    %44 = vector.broadcast %43 : i1 to vector<64x16xi1>
    %45 = vector.broadcast %44 : vector<64x16xi1> to vector<64x16xi1>
    %46 = arith.xori %42, %45 : vector<64x16xi1>
    %47 = arith.andi %46, %40 : vector<64x16xi1>
    %48 = vector.broadcast %36 : i32 to vector<64x16xi32>
    %49 = arith.addi %38, %48 : vector<64x16xi32>
    %50 = arith.select %47, %49, %38 : vector<64x16xi1>, vector<64x16xi32>
    %c2_i32_29 = arith.constant 2 : i32
    %c0_i32_30 = arith.constant 0 : i32
    %51 = arith.cmpi eq, %c2_i32_29, %c0_i32_30 : i32
    %c1_i32_31 = arith.constant 1 : i32
    %52 = arith.select %51, %c1_i32_31, %c2_i32_29 : i32
    %53 = vector.broadcast %52 : i32 to vector<64x16xi32>
    %54 = arith.remsi %34, %53 : vector<64x16xi32>
    %c0_i32_32 = arith.constant 0 : i32
    %55 = vector.broadcast %c0_i32_32 : i32 to vector<64x16xi32>
    %56 = arith.cmpi ne, %54, %55 : vector<64x16xi32>
    %c0_i32_33 = arith.constant 0 : i32
    %57 = vector.broadcast %c0_i32_33 : i32 to vector<64x16xi32>
    %58 = arith.cmpi slt, %54, %57 : vector<64x16xi32>
    %c0_i32_34 = arith.constant 0 : i32
    %59 = arith.cmpi slt, %52, %c0_i32_34 : i32
    %60 = vector.broadcast %59 : i1 to vector<64x16xi1>
    %61 = vector.broadcast %60 : vector<64x16xi1> to vector<64x16xi1>
    %62 = arith.xori %58, %61 : vector<64x16xi1>
    %63 = arith.andi %62, %56 : vector<64x16xi1>
    %64 = vector.broadcast %52 : i32 to vector<64x16xi32>
    %65 = arith.addi %54, %64 : vector<64x16xi32>
    %66 = arith.select %63, %65, %54 : vector<64x16xi1>, vector<64x16xi32>
    %67 = arith.cmpi eq, %50, %66 : vector<64x16xi32>
    %cst_35 = arith.constant -1.000000e+30 : f32
    %68 = vector.broadcast %cst_35 : f32 to vector<64x16xf32>
    %69 = arith.select %67, %32, %68 : vector<64x16xi1>, vector<64x16xf32>
    %cst_36 = arith.constant dense<0xFF800000> : vector<64xf32>
    %70 = vector.multi_reduction <maximumf>, %69, %cst_36 [1] : vector<64x16xf32> to vector<64xf32>
    %71 = vector.shape_cast %70 : vector<64xf32> to vector<64x1xf32>
    %72 = vector.broadcast %71 : vector<64x1xf32> to vector<64x16xf32>
    %73 = arith.subf %69, %72 : vector<64x16xf32>
    %74 = math.exp %73 : vector<64x16xf32>
    %cst_37 = arith.constant dense<0.000000e+00> : vector<64xf32>
    %75 = vector.multi_reduction <add>, %74, %cst_37 [1] : vector<64x16xf32> to vector<64xf32>
    %76 = vector.shape_cast %75 : vector<64xf32> to vector<64x1xf32>
    %77 = tpu.reciprocal %76 {approx = true} : vector<64x1xf32> -> vector<64x1xf32>
    %78 = vector.broadcast %77 : vector<64x1xf32> to vector<64x16xf32>
    %79 = arith.mulf %74, %78 : vector<64x16xf32>
    %80 = vector.extract_strided_slice %79 {offsets = [0, 0], sizes = [16, 16], strides = [1, 1]} : vector<64x16xf32> to vector<16x16xf32>
    %81 = vector.extract_strided_slice %19 {offsets = [0, 32], sizes = [16, 8], strides = [1, 1]} : vector<16x64xf32> to vector<16x8xf32>
    %cst_38 = arith.constant dense<0.000000e+00> : vector<16x8xf32>
    %82 = tpu.matmul %80, %81, %cst_38 {dimension_numbers = #tpu.dot_dimension_numbers<[1], [0], [0], [1], [0, 0, 1, 1], [], []>} : vector<16x16xf32>, vector<16x8xf32>, vector<16x8xf32> -> vector<16x8xf32>
    %83 = vector.extract_strided_slice %4 {offsets = [0, 0], sizes = [8, 32], strides = [1, 1]} : vector<32x32xf32> to vector<8x32xf32>
    %cst_39 = arith.constant dense<0.000000e+00> : vector<16x32xf32>
    %84 = tpu.matmul %82, %83, %cst_39 {dimension_numbers = #tpu.dot_dimension_numbers<[1], [0], [0], [1], [0, 0, 1, 1], [], []>} : vector<16x8xf32>, vector<8x32xf32>, vector<16x32xf32> -> vector<16x32xf32>
    %85 = arith.addf %9, %84 : vector<16x32xf32>
    %86 = vector.extract_strided_slice %79 {offsets = [16, 0], sizes = [16, 16], strides = [1, 1]} : vector<64x16xf32> to vector<16x16xf32>
    %87 = vector.extract_strided_slice %19 {offsets = [0, 40], sizes = [16, 8], strides = [1, 1]} : vector<16x64xf32> to vector<16x8xf32>
    %cst_40 = arith.constant dense<0.000000e+00> : vector<16x8xf32>
    %88 = tpu.matmul %86, %87, %cst_40 {dimension_numbers = #tpu.dot_dimension_numbers<[1], [0], [0], [1], [0, 0, 1, 1], [], []>} : vector<16x16xf32>, vector<16x8xf32>, vector<16x8xf32> -> vector<16x8xf32>
    %89 = vector.extract_strided_slice %4 {offsets = [8, 0], sizes = [8, 32], strides = [1, 1]} : vector<32x32xf32> to vector<8x32xf32>
    %cst_41 = arith.constant dense<0.000000e+00> : vector<16x32xf32>
    %90 = tpu.matmul %88, %89, %cst_41 {dimension_numbers = #tpu.dot_dimension_numbers<[1], [0], [0], [1], [0, 0, 1, 1], [], []>} : vector<16x8xf32>, vector<8x32xf32>, vector<16x32xf32> -> vector<16x32xf32>
    %91 = arith.addf %85, %90 : vector<16x32xf32>
    %92 = vector.extract_strided_slice %79 {offsets = [32, 0], sizes = [16, 16], strides = [1, 1]} : vector<64x16xf32> to vector<16x16xf32>
    %93 = vector.extract_strided_slice %19 {offsets = [0, 48], sizes = [16, 8], strides = [1, 1]} : vector<16x64xf32> to vector<16x8xf32>
    %cst_42 = arith.constant dense<0.000000e+00> : vector<16x8xf32>
    %94 = tpu.matmul %92, %93, %cst_42 {dimension_numbers = #tpu.dot_dimension_numbers<[1], [0], [0], [1], [0, 0, 1, 1], [], []>} : vector<16x16xf32>, vector<16x8xf32>, vector<16x8xf32> -> vector<16x8xf32>
    %95 = vector.extract_strided_slice %4 {offsets = [16, 0], sizes = [8, 32], strides = [1, 1]} : vector<32x32xf32> to vector<8x32xf32>
    %cst_43 = arith.constant dense<0.000000e+00> : vector<16x32xf32>
    %96 = tpu.matmul %94, %95, %cst_43 {dimension_numbers = #tpu.dot_dimension_numbers<[1], [0], [0], [1], [0, 0, 1, 1], [], []>} : vector<16x8xf32>, vector<8x32xf32>, vector<16x32xf32> -> vector<16x32xf32>
    %97 = arith.addf %91, %96 : vector<16x32xf32>
    %98 = vector.extract_strided_slice %79 {offsets = [48, 0], sizes = [16, 16], strides = [1, 1]} : vector<64x16xf32> to vector<16x16xf32>
    %99 = vector.extract_strided_slice %19 {offsets = [0, 56], sizes = [16, 8], strides = [1, 1]} : vector<16x64xf32> to vector<16x8xf32>
    %cst_44 = arith.constant dense<0.000000e+00> : vector<16x8xf32>
    %100 = tpu.matmul %98, %99, %cst_44 {dimension_numbers = #tpu.dot_dimension_numbers<[1], [0], [0], [1], [0, 0, 1, 1], [], []>} : vector<16x16xf32>, vector<16x8xf32>, vector<16x8xf32> -> vector<16x8xf32>
    %101 = vector.extract_strided_slice %4 {offsets = [24, 0], sizes = [8, 32], strides = [1, 1]} : vector<32x32xf32> to vector<8x32xf32>
    %cst_45 = arith.constant dense<0.000000e+00> : vector<16x32xf32>
    %102 = tpu.matmul %100, %101, %cst_45 {dimension_numbers = #tpu.dot_dimension_numbers<[1], [0], [0], [1], [0, 0, 1, 1], [], []>} : vector<16x8xf32>, vector<8x32xf32>, vector<16x32xf32> -> vector<16x32xf32>
    %103 = arith.addf %97, %102 : vector<16x32xf32>
    %104 = arith.addf %0, %103 : vector<16x32xf32>
    %cst_46 = arith.constant dense<0.000000e+00> : vector<16xf32>
    %105 = vector.multi_reduction <add>, %104, %cst_46 [1] : vector<16x32xf32> to vector<16xf32>
    %106 = vector.shape_cast %105 : vector<16xf32> to vector<16x1xf32>
    %cst_47 = arith.constant 3.200000e+01 : f32
    %107 = vector.broadcast %cst_47 : f32 to vector<16x1xf32>
    %108 = arith.divf %106, %107 : vector<16x1xf32>
    %109 = vector.broadcast %108 : vector<16x1xf32> to vector<16x32xf32>
    %110 = arith.subf %104, %109 : vector<16x32xf32>
    %111 = arith.mulf %110, %110 : vector<16x32xf32>
    %cst_48 = arith.constant dense<0.000000e+00> : vector<16xf32>
    %112 = vector.multi_reduction <add>, %111, %cst_48 [1] : vector<16x32xf32> to vector<16xf32>
    %113 = vector.shape_cast %112 : vector<16xf32> to vector<16x1xf32>
    %cst_49 = arith.constant 3.200000e+01 : f32
    %114 = vector.broadcast %cst_49 : f32 to vector<16x1xf32>
    %115 = arith.divf %113, %114 : vector<16x1xf32>
    %cst_50 = arith.constant 9.99999974E-6 : f32
    %116 = vector.broadcast %cst_50 : f32 to vector<16x1xf32>
    %117 = arith.addf %115, %116 : vector<16x1xf32>
    %118 = math.rsqrt %117 : vector<16x1xf32>
    %119 = vector.broadcast %118 : vector<16x1xf32> to vector<16x32xf32>
    %120 = arith.mulf %110, %119 : vector<16x32xf32>
    %121 = arith.mulf %120, %12 : vector<16x32xf32>
    %122 = arith.addf %121, %13 : vector<16x32xf32>
    %cst_51 = arith.constant dense<0.000000e+00> : vector<16x64xf32>
    %123 = tpu.matmul %122, %5, %cst_51 {dimension_numbers = #tpu.dot_dimension_numbers<[1], [0], [0], [1], [0, 0, 1, 1], [], []>} : vector<16x32xf32>, vector<32x64xf32>, vector<16x64xf32> -> vector<16x64xf32>
    %124 = arith.addf %123, %10 : vector<16x64xf32>
    %cst_52 = arith.constant 5.000000e-01 : f32
    %125 = vector.broadcast %cst_52 : f32 to vector<16x64xf32>
    %126 = arith.mulf %125, %124 : vector<16x64xf32>
    %cst_53 = arith.constant 0.707106769 : f32
    %127 = vector.broadcast %cst_53 : f32 to vector<16x64xf32>
    %128 = arith.mulf %124, %127 : vector<16x64xf32>
    %129 = math.erf %128 : vector<16x64xf32>
    %cst_54 = arith.constant 1.000000e+00 : f32
    %130 = vector.broadcast %cst_54 : f32 to vector<16x64xf32>
    %131 = arith.addf %130, %129 : vector<16x64xf32>
    %132 = arith.mulf %126, %131 : vector<16x64xf32>
    %cst_55 = arith.constant dense<0.000000e+00> : vector<16x32xf32>
    %133 = tpu.matmul %132, %6, %cst_55 {dimension_numbers = #tpu.dot_dimension_numbers<[1], [0], [0], [1], [0, 0, 1, 1], [], []>} : vector<16x64xf32>, vector<64x32xf32>, vector<16x32xf32> -> vector<16x32xf32>
    %134 = arith.addf %133, %11 : vector<16x32xf32>
    %135 = arith.addf %122, %134 : vector<16x32xf32>
    %cst_56 = arith.constant dense<0.000000e+00> : vector<16xf32>
    %136 = vector.multi_reduction <add>, %135, %cst_56 [1] : vector<16x32xf32> to vector<16xf32>
    %137 = vector.shape_cast %136 : vector<16xf32> to vector<16x1xf32>
    %cst_57 = arith.constant 3.200000e+01 : f32
    %138 = vector.broadcast %cst_57 : f32 to vector<16x1xf32>
    %139 = arith.divf %137, %138 : vector<16x1xf32>
    %140 = vector.broadcast %139 : vector<16x1xf32> to vector<16x32xf32>
    %141 = arith.subf %135, %140 : vector<16x32xf32>
    %142 = arith.mulf %141, %141 : vector<16x32xf32>
    %cst_58 = arith.constant dense<0.000000e+00> : vector<16xf32>
    %143 = vector.multi_reduction <add>, %142, %cst_58 [1] : vector<16x32xf32> to vector<16xf32>
    %144 = vector.shape_cast %143 : vector<16xf32> to vector<16x1xf32>
    %cst_59 = arith.constant 3.200000e+01 : f32
    %145 = vector.broadcast %cst_59 : f32 to vector<16x1xf32>
    %146 = arith.divf %144, %145 : vector<16x1xf32>
    %cst_60 = arith.constant 9.99999974E-6 : f32
    %147 = vector.broadcast %cst_60 : f32 to vector<16x1xf32>
    %148 = arith.addf %146, %147 : vector<16x1xf32>
    %149 = math.rsqrt %148 : vector<16x1xf32>
    %150 = vector.broadcast %149 : vector<16x1xf32> to vector<16x32xf32>
    %151 = arith.mulf %141, %150 : vector<16x32xf32>
    %152 = arith.mulf %151, %14 : vector<16x32xf32>
    %153 = arith.addf %152, %15 : vector<16x32xf32>
    %c0_61 = arith.constant 0 : index
    %c0_62 = arith.constant 0 : index
    %154 = vector.load %arg6[%c0_61, %c0_62] : memref<16x32xf32, #tpu.memory_space<vmem>>, vector<16x32xf32>
    tpu.vector_store %arg6[%c0_61, %c0_62], %153 {strides = array<i32>} : memref<16x32xf32, #tpu.memory_space<vmem>>, vector<16x32xf32>,
    return
  }
  func.func @transform_0(%arg0: i32) -> (i32, i32) {
    %c0_i32 = arith.constant 0 : i32
    %c0_i32_0 = arith.constant 0 : i32
    %c0_i32_1 = arith.constant 0 : i32
    return %c0_i32, %c0_i32_0 : i32, i32
  }
  func.func @transform_1(%arg0: i32) -> (i32, i32) {
    %c0_i32 = arith.constant 0 : i32
    %c0_i32_0 = arith.constant 0 : i32
    %c0_i32_1 = arith.constant 0 : i32
    return %c0_i32, %c0_i32_0 : i32, i32
  }
  func.func @transform_2(%arg0: i32) -> (i32, i32) {
    %c0_i32 = arith.constant 0 : i32
    %c0_i32_0 = arith.constant 0 : i32
    %c0_i32_1 = arith.constant 0 : i32
    return %c0_i32, %c0_i32_0 : i32, i32
  }
  func.func @transform_3(%arg0: i32) -> (i32, i32) {
    %c0_i32 = arith.constant 0 : i32
    %c0_i32_0 = arith.constant 0 : i32
    %c0_i32_1 = arith.constant 0 : i32
    return %c0_i32, %c0_i32_0 : i32, i32
  }
  func.func @transform_4(%arg0: i32) -> (i32, i32) {
    %c0_i32 = arith.constant 0 : i32
    %c0_i32_0 = arith.constant 0 : i32
    %c0_i32_1 = arith.constant 0 : i32
    return %c0_i32, %c0_i32_0 : i32, i32
  }
  func.func @transform_5(%arg0: i32) -> (i32, i32) {
    %c0_i32 = arith.constant 0 : i32
    %c0_i32_0 = arith.constant 0 : i32
    %c0_i32_1 = arith.constant 0 : i32
    return %c0_i32, %c0_i32_0 : i32, i32
  }
}

</mosaic_0001>

<bundles_post_ra>
// kernel: tpu_custom_call.1
= control target key start
LH: loop header
LB: loop body
LE: loop exit
PB: predicated region body
PF: predicated region fallthrough
CT: control target
= control target key end

     0   :  { %s1500_s0 = inlined_call_operand.vmem [shape: f32[16,32], index: 0, kind: input, shape index: {}]   ;;  %s1501_s1 = inlined_call_operand.vmem [shape: f32[16,32], index: 1, kind: input, shape index: {}]   ;;  %s1502_s2 = inlined_call_operand.vmem [shape: f32[32,512], index: 2, kind: input, shape index: {}]   ;;  %s1503_s3 = inlined_call_operand.vmem [shape: f32[64,32], index: 3, kind: input, shape index: {}]   ;;  %s1504_s4 = inlined_call_operand.vmem [shape: f32[144,64], index: 4, kind: input, shape index: {}]   ;;  %s1505_s5 = inlined_call_operand.hbm [shape: f32[16,32], index: 5, kind: output, shape index: {}]  }
   0x1   :  { %v28_v0 = vld [vmem:[%s1502_s2 + $0x60] sm:$0xff]  ;;  %v32_v1 = vld [vmem:[%s1502_s2 + $0x68] sm:$0xff] }
   0x2   :  { %v27_v2 = vld [vmem:[%s1502_s2 + $0x40] sm:$0xff]  ;;  %86 = vmatpush.msra.mxu0 %v28_v0  ;;  %115 = vmatpush.msra.mxu1 %v32_v1  ;;  %v31_v3 = vld [vmem:[%s1502_s2 + $0x48] sm:$0xff] }
   0x3   :  { %v26_v4 = vld [vmem:[%s1502_s2 + $0x20] sm:$0xff]  ;;  %v30_v5 = vld [vmem:[%s1502_s2 + $0x28] sm:$0xff] }
   0x4   :  { %87 = vmatpush.msra.mxu0 %v27_v2  ;;  %116 = vmatpush.msra.mxu1 %v31_v3  ;;  %v25_v6 = vld [vmem:[%s1502_s2] sm:$0xff]  ;;  %v29_v7 = vld [vmem:[%s1502_s2 + $0x8] sm:$0xff] }
   0x5   :  { %10 = vsyncpa [#allocation3], 0  ;;  %v1254_v8 = vld [vmem:[%s1500_s0] sm:$0xff]  ;;  %vm67_vm0 = vcmask 261120   ;;  %v24_v10 = vld [vmem:[%s1501_s1 + $0x8] sm:$0xff]  ;;  %vm126_vm1 = vcmask 64512   ;;  %v279_v31 = vlaneseq }
   0x6   :  { %88 = vmatpush.msra.mxu0 %v26_v4  ;;  %117 = vmatpush.msra.mxu1 %v30_v5  ;;  %v23_v9 = vld [vmem:[%s1501_s1] sm:$0xff]  ;;  %v1268_v11 = vld [vmem:[%s1500_s0 + $0x8] sm:$0xff]  ;;  %v51_v13 = vld [vmem:[%s1504_s4 + $0x10] sm:$0xff]  ;;  %s1186_s1 = smov 112   ;;  %s1187_s0 = smov 120   ;;  %vm414_vm3 = vcmask 130048  }
   0x7   :  { %v49_v12 = vld [vmem:[%s1504_s4] sm:$0xff]  ;;  %v52_v18 = vld [vmem:[%s1504_s4 + $0x18] sm:$0xff]  ;;  %v50_v19 = vld [vmem:[%s1504_s4 + $0x8] sm:$0xff]  ;;  %s1188_s25 = smov 104   ;;  %v280_v33 = vshrl.u32 %v279_v31, 7  ;;  %v289_v34 = vand.u32 127, %v279_v31 }
   0x8   :  { %89 = vmatpush.msra.mxu0 %v25_v6  ;;  %118 = vmatpush.msra.mxu1 %v29_v7  ;;  %s1189_s26 = smov 96   ;;  %s1190_s27 = smov 80  }
   0x9   :  { %1041 = vmatmul.msk.f32.vlgmr.msra.gmra.mxu0 %vm67_vm0, %v1254_v8  ;;  %1043 = vmatmul.msk.f32.vlgmr.msra.gmra.mxu1 %vm67_vm0, %v23_v9  ;;  %v294_v36 = vand.u32 1, %v280_v33  ;;  %v1298_v37 = vand.u32 1, %v289_v34  ;;  %v281_v39 = vadd.s32 8, %v280_v33  ;;  %v284_v50 = vadd.s32 32, %v280_v33  ;;  %s1191_s28 = smov 88   ;;  %s1192_s29 = smov 72  }
   0xa   :  { %v285_v52 = vadd.s32 40, %v280_v33  ;;  %v286_v57 = vadd.s32 48, %v280_v33  ;;  %v282_v62 = vadd.s32 16, %v280_v33  ;;  %v287_v1 = vadd.s32 56, %v280_v33  ;;  %s1194_s6 = smov [#allocation2]   ;;  %s1029_s10 = sshll.u32 %s1505_s5, 4  ;;  %s1030_s10 = int_to_ptr.hbm [resolvable:$true] %s1029_s10 }
   0xb   :  { %vm398_vm2 = vcmp.eq.s32.totalorder %v294_v36, %v1298_v37  ;;  %v301_v44 = vand.u32 1, %v281_v39  ;;  %v322_v51 = vand.u32 1, %v284_v50  ;;  %s1027_s7 = sshll.u32 %s1194_s6, 4  ;;  %s1195_s13 = smov 128   ;;  %s1028_s7 = int_to_ptr.vmem [resolvable:$true] %s1027_s7 }
   0xc   :  { %v329_v59 = vand.u32 1, %v285_v52  ;;  %v336_v61 = vand.u32 1, %v286_v57  ;;  %v308_v3 = vand.u32 1, %v282_v62  ;;  %v343_v9 = vand.u32 1, %v287_v1  ;;  %s1196_s14 = smov 8  }
   0xd   :  { %vm399_vm4 = vcmp.eq.s32.totalorder %v301_v44, %v1298_v37  ;;  %vm402_vm5 = vcmp.eq.s32.totalorder %v322_v51, %v1298_v37 }
   0xe   :  { %vm403_vm6 = vcmp.eq.s32.totalorder %v329_v59, %v1298_v37  ;;  %vm404_vm7 = vcmp.eq.s32.totalorder %v336_v61, %v1298_v37  ;;  %vm400_vm8 = vcmp.eq.s32.totalorder %v308_v3, %v1298_v37  ;;  %vm405_vm9 = vcmp.eq.s32.totalorder %v343_v9, %v1298_v37  ;;  %v33_v9 = vld [vmem:[%s1502_s2 + $0x10] sm:$0xff] }
  0x11   :  { %1044 = vmatmul.msk.f32.gmra.mxu1 %vm67_vm0, %v24_v10  ;;  %1042 = vmatmul.msk.f32.gmra.mxu0 %vm67_vm0, %v1268_v11  ;;  %v283_v10 = vadd.s32 24, %v280_v33 }
  0x86   :  { %v91_v14 = vpop.f32.mrf.mxu0  ;;  %v120_v15 = vpop.f32.mrf.mxu1 }
  0x87   :  { %v92_v16 = vadd.f32 %v91_v14, %v49_v12  ;;  %v121_v17 = vadd.f32 %v120_v15, %v51_v13  ;;  %v315_v14 = vand.u32 1, %v283_v10 }
  0x89   :  { %205 = vrot.lane.b32.xlu2 %v121_v17, %s1186_s1  ;;  %162 = vrot.lane.b32.xlu1 %v92_v16, %s1187_s0  ;;  %vm401_vm10 = vcmp.eq.s32.totalorder %v315_v14, %v1298_v37 }
  0x8e   :  { %v123_v20 = vpop.f32.mrf.mxu1  ;;  %v94_v21 = vpop.f32.mrf.mxu0 }
  0x8f   :  { %v124_v22 = vadd.f32 %v123_v20, %v52_v18  ;;  %v95_v23 = vadd.f32 %v94_v21, %v50_v19 }
  0x91   :  { %168 = vrot.lane.b32.xlu0 %v124_v22, %s1187_s0  ;;  %1045 = vmatpush.xpose.msk.msra.mxu2 %vm126_vm1, %v124_v22  ;;  %v1286_v24 = vpack.i.bf16 %v121_v17, %v124_v22 }
  0x92   :  { %207 = vrot.lane.b32.xlu1 %v124_v22, %s1186_s1  ;;  %164 = vrot.lane.b32.xlu2 %v95_v23, %s1187_s0 }
  0x95   :  { %1046 = vmatpush.xpose.msk.msra.mxu2 %vm126_vm1, %v121_v17 }
  0x98   :  { %1047 = vmatmul.msk.f32.vlgmr.msra.gmra.mxu2 %vm126_vm1, %v92_v16 }
  0x99   :  { %166 = vrot.lane.b32.xlu0 %v121_v17, %s1187_s0 }
  0x9a   :  { %246 = vrot.lane.b32.xlu1 %v124_v22, %s1188_s25  ;;  %203 = vrot.lane.b32.xlu2 %v95_v23, %s1186_s1 }
  0xa0   :  { %1048 = vmatmul.msk.f32.gmra.mxu2 %vm126_vm1, %v95_v23 }
  0xa1   :  { %201 = vrot.lane.b32.xlu0 %v92_v16, %s1186_s1 }
  0xa2   :  { %240 = vrot.lane.b32.xlu1 %v92_v16, %s1188_s25  ;;  %242 = vrot.lane.b32.xlu2 %v95_v23, %s1188_s25 }
  0xa9   :  { %244 = vrot.lane.b32.xlu0 %v121_v17, %s1188_s25 }
  0xe3   :  { %v206_v28 = vpop.permute.xlu2 %205 }
  0xec   :  { %v165_v32 = vpop.permute.xlu2 %164 }
  0xf4   :  { %v204_v38 = vpop.permute.xlu2 %203 }
  0xfb   :  { %v163_v25 = vpop.permute.xlu1 %162 }
  0xfc   :  { %v243_v48 = vpop.permute.xlu2 %242 }
 0x103   :  { %v169_v26 = vpop.permute.xlu0 %168 }
 0x104   :  { %v208_v27 = vpop.permute.xlu1 %207  ;;  %1049 = vmatpush.xpose.msk.msra.mxu3 %vm126_vm1, %v169_v26 }
 0x105   :  { %1053 = vmatpush.xpose.msk.msrb.mxu0 %vm126_vm1, %v208_v27 }
 0x109   :  { %1054 = vmatpush.xpose.msk.msrb.mxu0 %vm126_vm1, %v206_v28 }
 0x10b   :  { %v167_v29 = vpop.permute.xlu0 %166 }
 0x10c   :  { %v247_v30 = vpop.permute.xlu1 %246  ;;  %1050 = vmatpush.xpose.msk.msra.mxu3 %vm126_vm1, %v167_v29 }
 0x10d   :  { %1057 = vmatpush.xpose.msk.msrb.mxu1 %vm126_vm1, %v247_v30 }
 0x10f   :  { %1051 = vmatmul.msk.f32.vlgmr.msra.gmra.mxu3 %vm126_vm1, %v163_v25 }
 0x110   :  { %559 = vmatpush.msrb.mxu3 %v33_v9 }
 0x113   :  { %v202_v35 = vpop.permute.xlu0 %201 }
 0x114   :  { %1055 = vmatmul.msk.f32.vlgmr.msrb.gmra.mxu0 %vm126_vm1, %v202_v35  ;;  %v241_v45 = vpop.permute.xlu1 %240 }
 0x117   :  { %1052 = vmatmul.msk.f32.gmra.mxu3 %vm126_vm1, %v165_v32 }
 0x11b   :  { %v245_v40 = vpop.permute.xlu0 %244  ;;  %v156_v41 = vpop.f32.mrf.mxu2 }
 0x11c   :  { %v406_v42 = vsel %vm398_vm2, %v156_v41, -1e+30  ;;  %1056 = vmatmul.msk.f32.gmra.mxu0 %vm126_vm1, %v204_v38  ;;  %1058 = vmatpush.xpose.msk.msrb.mxu1 %vm126_vm1, %v245_v40 }
 0x11d   :  { %v415_v43 = vsel %vm414_vm3, %v406_v42, -inf }
 0x11e   :  { %416 = vmax.xlane.f32.xlu0 %v415_v43 }
 0x11f   :  { %1059 = vmatmul.msk.f32.vlgmr.msrb.gmra.mxu1 %vm126_vm1, %v241_v45 }
 0x123   :  { %v159_v46 = vpop.f32.mrf.mxu2 }
 0x124   :  { %v407_v47 = vsel %vm399_vm4, %v159_v46, -1e+30 }
 0x125   :  { %v418_v49 = vsel %vm414_vm3, %v407_v47, -inf }
 0x126   :  { %419 = vmax.xlane.f32.xlu1 %v418_v49 }
 0x127   :  { %1060 = vmatmul.msk.f32.gmra.mxu1 %vm126_vm1, %v243_v48 }
 0x191   :  { %v234_v53 = vpop.f32.mrf.mxu0  ;;  %v417_v54 = vpop.xlane.xlu0 %416 }
 0x192   :  { %v410_v55 = vsel %vm402_vm5, %v234_v53, -1e+30  ;;  %v439_v56 = vsub.f32 %v406_v42, %v417_v54  ;;  %v195_v6 = vpop.f32.mrf.mxu3 }
 0x193   :  { %v427_v58 = vsel %vm414_vm3, %v410_v55, -inf  ;;  %v408_v15 = vsel %vm400_vm8, %v195_v6, -1e+30 }
 0x194   :  { %428 = vmax.xlane.f32.xlu2 %v427_v58  ;;  %v447_v60 = vmul.f32 1.442695, %v439_v56  ;;  %v421_v20 = vsel %vm414_vm3, %v408_v15, -inf }
 0x196   :  { %1114 = vpow2.f32 %v447_v60 }
 0x199   :  { %v237_v63 = vpop.f32.mrf.mxu0  ;;  %v420_v13 = vpop.xlane.xlu1 %419 }
 0x19a   :  { %v411_v0 = vsel %vm403_vm6, %v237_v63, -1e+30  ;;  %v440_v18 = vsub.f32 %v407_v47, %v420_v13  ;;  %v198_v22 = vpop.f32.mrf.mxu3 }
 0x19b   :  { %v430_v2 = vsel %vm414_vm3, %v411_v0, -inf  ;;  %v409_v25 = vsel %vm401_vm10, %v198_v22, -1e+30 }
 0x19c   :  { %v273_v4 = vpop.f32.mrf.mxu1  ;;  %431 = vmax.xlane.f32.xlu1 %v430_v2  ;;  %v1315_v12 = vpop.eup %1114  ;;  %v449_v23 = vmul.f32 1.442695, %v440_v18  ;;  %v424_v26 = vsel %vm414_vm3, %v409_v25, -inf }
 0x19d   :  { %v412_v5 = vsel %vm404_vm7, %v273_v4, -1e+30  ;;  %v463_v16 = vsel %vm414_vm3, %v1315_v12, 0.0  ;;  %vm941_vm7 = vcmask 523264  }
 0x19e   :  { %v433_v7 = vsel %vm414_vm3, %v412_v5, -inf  ;;  %1116 = vpow2.f32 %v449_v23 }
 0x19f   :  { %434 = vmax.xlane.f32.xlu2 %v433_v7 }
 0x1a4   :  { %v276_v17 = vpop.f32.mrf.mxu1  ;;  %464 = vadd.xlane.f32.xlu1 %v463_v16  ;;  %v1117_v27 = vpop.eup %1116 }
 0x1a5   :  { %v1321_v19 = vsel %vm405_vm9, %v276_v17, -1e+30  ;;  %v466_v28 = vsel %vm414_vm3, %v1117_v27, 0.0 }
 0x1a6   :  { %v436_v21 = vsel %vm414_vm3, %v1321_v19, -inf }
 0x1a7   :  { %422 = vmax.xlane.f32.xlu2 %v421_v20  ;;  %437 = vmax.xlane.f32.xlu0 %v436_v21 }
 0x1af   :  { %425 = vmax.xlane.f32.xlu0 %v424_v26 }
 0x1b7   :  { %467 = vadd.xlane.f32.xlu0 %v466_v28 }
 0x1bf   :  { %1095 = vrot.lane.b32.xlu2 %v1286_v24, %s1189_s26 }
 0x1c7   :  { %1105 = vrot.lane.b32.xlu2 %v1286_v24, %s1190_s27 }
 0x207   :  { %v429_v29 = vpop.xlane.xlu2 %428 }
 0x208   :  { %v443_v30 = vsub.f32 %v410_v55, %v429_v29 }
 0x20a   :  { %v455_v31 = vmul.f32 1.442695, %v443_v30 }
 0x20c   :  { %1118 = vpow2.f32 %v455_v31 }
 0x20f   :  { %v432_v32 = vpop.xlane.xlu1 %431 }
 0x210   :  { %v444_v33 = vsub.f32 %v411_v0, %v432_v32 }
 0x212   :  { %v1331_v34 = vpop.eup %1118  ;;  %v457_v35 = vmul.f32 1.442695, %v444_v33  ;;  %v435_v36 = vpop.xlane.xlu2 %434 }
 0x213   :  { %v445_v37 = vsub.f32 %v412_v5, %v435_v36  ;;  %v475_v38 = vsel %vm414_vm3, %v1331_v34, 0.0  ;;  %v35_v36 = vld [vmem:[%s1502_s2 + $0x50] sm:$0xff] }
 0x214   :  { %1120 = vpow2.f32 %v457_v35  ;;  %476 = vadd.xlane.f32.xlu0 %v475_v38  ;;  %691 = vmatpush.msra.mxu3 %v35_v36  ;;  %v34_v38 = vld [vmem:[%s1502_s2 + $0x30] sm:$0xff]  ;;  %v61_v36 = vld [vmem:[%s1504_s4 + $0x60] sm:$0xff] }
 0x215   :  { %v459_v39 = vmul.f32 1.442695, %v445_v37  ;;  %625 = vmatpush.msra.mxu1 %v34_v38 }
 0x217   :  { %1122 = vpow2.f32 %v459_v39  ;;  %v465_v40 = vpop.xlane.xlu1 %464 }
 0x218   :  { %1124 = vrcp.f32 %v465_v40  ;;  %v36_v40 = vld [vmem:[%s1502_s2 + $0x70] sm:$0xff] }
 0x219   :  { %757 = vmatpush.msrb.mxu1 %v36_v40 }
 0x21a   :  { %v1121_v41 = vpop.eup %1120  ;;  %v423_v42 = vpop.xlane.xlu2 %422 }
 0x21b   :  { %v438_v43 = vpop.xlane.xlu0 %437  ;;  %v441_v44 = vsub.f32 %v408_v15, %v423_v42  ;;  %v478_v45 = vsel %vm414_vm3, %v1121_v41, 0.0 }
 0x21c   :  { %479 = vadd.xlane.f32.xlu0 %v478_v45  ;;  %v446_v3 = vsub.f32 %v1321_v19, %v438_v43 }
 0x21d   :  { %v1336_v46 = vpop.eup %1122  ;;  %v451_v47 = vmul.f32 1.442695, %v441_v44 }
 0x21e   :  { %v481_v48 = vsel %vm414_vm3, %v1336_v46, 0.0  ;;  %v1125_v51 = vpop.eup %1124  ;;  %v461_v4 = vmul.f32 1.442695, %v446_v3  ;;  %v1193_v3 = vmov 32.0  }
 0x21f   :  { %1126 = vpow2.f32 %v451_v47  ;;  %482 = vadd.xlane.f32.xlu2 %v481_v48  ;;  %v495_v58 = vmul.f32 %v1125_v51, %v1315_v12  ;;  %v53_v47 = vld [vmem:[%s1504_s4 + $0x20] sm:$0xff] }
 0x222   :  { %v1096_v49 = vpop.permute.xlu2 %1095 }
 0x223   :  { %v426_v50 = vpop.xlane.xlu0 %425  ;;  %v1097_v53 = vunpack.i.l.bf16 %v1096_v49  ;;  %v1098_v56 = vunpack.i.h.bf16 %v1096_v49 }
 0x224   :  { %v442_v52 = vsub.f32 %v409_v25, %v426_v50 }
 0x225   :  { %v1127_v54 = vpop.eup %1126  ;;  %529 = vmatpush.msrb.mxu2 %v1097_v53 }
 0x226   :  { %v453_v55 = vmul.f32 1.442695, %v442_v52  ;;  %v469_v57 = vsel %vm414_vm3, %v1127_v54, 0.0 }
 0x227   :  { %530 = vmatpush.msrb.mxu2 %v1098_v56  ;;  %470 = vadd.xlane.f32.xlu1 %v469_v57 }
 0x228   :  { %1128 = vpow2.f32 %v453_v55  ;;  %1061 = vmatmul.msk.f32.vlgmr.msrb.gmra.mxu2 %vm414_vm3, %v495_v58  ;;  %v54_v58 = vld [vmem:[%s1504_s4 + $0x28] sm:$0xff] }
 0x22a   :  { %v1106_v59 = vpop.permute.xlu2 %1105 }
 0x22b   :  { %v468_v60 = vpop.xlane.xlu0 %467  ;;  %v1107_v61 = vunpack.i.l.bf16 %v1106_v59  ;;  %v1108_v63 = vunpack.i.h.bf16 %v1106_v59 }
 0x22c   :  { %1130 = vrcp.f32 %v468_v60 }
 0x22d   :  { %661 = vmatpush.msra.mxu2 %v1107_v61  ;;  %1132 = vpow2.f32 %v461_v4 }
 0x22e   :  { %v1129_v62 = vpop.eup %1128 }
 0x22f   :  { %v472_v0 = vsel %vm414_vm3, %v1129_v62, 0.0  ;;  %662 = vmatpush.msra.mxu2 %v1108_v63 }
 0x230   :  { %473 = vadd.xlane.f32.xlu0 %v472_v0 }
 0x232   :  { %v1131_v1 = vpop.eup %1130 }
 0x233   :  { %v496_v2 = vmul.f32 %v1131_v1, %v1117_v27  ;;  %v1133_v5 = vpop.eup %1132 }
 0x234   :  { %v484_v6 = vsel %vm414_vm3, %v1133_v5, 0.0 }
 0x235   :  { %1062 = vmatmul.msk.f32.gmra.mxu2 %vm414_vm3, %v496_v2 }
 0x240   :  { %1100 = vrot.lane.b32.xlu1 %v1286_v24, %s1191_s28 }
 0x244   :  { %1110 = vrot.lane.b32.xlu0 %v1286_v24, %s1192_s29 }
 0x26a   :  { %485 = vadd.xlane.f32.xlu1 %v484_v6 }
 0x287   :  { %v477_v7 = vpop.xlane.xlu0 %476 }
 0x288   :  { %1134 = vrcp.f32 %v477_v7 }
 0x28e   :  { %v1135_v10 = vpop.eup %1134 }
 0x28f   :  { %v499_v12 = vmul.f32 %v1135_v10, %v1331_v34  ;;  %v480_v13 = vpop.xlane.xlu0 %479 }
 0x290   :  { %1136 = vrcp.f32 %v480_v13 }
 0x291   :  { %1069 = vmatmul.msk.f32.vlgmr.msra.gmra.mxu2 %vm414_vm3, %v499_v12 }
 0x292   :  { %v483_v28 = vpop.xlane.xlu2 %482 }
 0x296   :  { %v1137_v24 = vpop.eup %1136 }
 0x297   :  { %v500_v14 = vmul.f32 %v1137_v24, %v1121_v41 }
 0x299   :  { %1070 = vmatmul.msk.f32.gmra.mxu2 %vm414_vm3, %v500_v14 }
 0x29a   :  { %v471_v15 = vpop.xlane.xlu1 %470 }
 0x29b   :  { %1138 = vrcp.f32 %v471_v15 }
 0x2a1   :  { %v1139_v19 = vpop.eup %1138 }
 0x2a2   :  { %v497_v23 = vmul.f32 %v1139_v19, %v1127_v54  ;;  %v40_v19 = vld [vmem:[%s1502_s2 + $0x78] sm:$0xff] }
 0x2a3   :  { %v474_v17 = vpop.xlane.xlu0 %473  ;;  %842 = vmatpush.msrb.mxu2 %v40_v19 }
 0x2a4   :  { %1140 = vrcp.f32 %v474_v17 }
 0x2a5   :  { %1142 = vrcp.f32 %v483_v28 }
 0x2aa   :  { %v1141_v29 = vpop.eup %1140 }
 0x2ab   :  { %v532_v16 = vpop.f32.mrf.mxu2  ;;  %v498_v30 = vmul.f32 %v1141_v29, %v1129_v62  ;;  %v1143_v31 = vpop.eup %1142 }
 0x2ac   :  { %1063 = vmatmul.msk.f32.vlgmr.msrb.gmra.mxu3 %vm126_vm1, %v532_v16  ;;  %v501_v32 = vmul.f32 %v1143_v31, %v1336_v46 }
 0x2b2   :  { %v1101_v18 = vpop.permute.xlu1 %1100 }
 0x2b3   :  { %v1102_v20 = vunpack.i.l.bf16 %v1101_v18  ;;  %v1103_v21 = vunpack.i.h.bf16 %v1101_v18 }
 0x2b5   :  { %595 = vmatpush.msra.mxu0 %v1102_v20  ;;  %v39_v20 = vld [vmem:[%s1502_s2 + $0x58] sm:$0xff] }
 0x2b6   :  { %v1111_v22 = vpop.permute.xlu0 %1110  ;;  %843 = vmatpush.msrb.mxu2 %v39_v20 }
 0x2b7   :  { %v1112_v25 = vunpack.i.l.bf16 %v1111_v22  ;;  %596 = vmatpush.msra.mxu0 %v1103_v21  ;;  %v1113_v27 = vunpack.i.h.bf16 %v1111_v22  ;;  %v38_v21 = vld [vmem:[%s1502_s2 + $0x38] sm:$0xff] }
 0x2b8   :  { %v535_v26 = vpop.f32.mrf.mxu2  ;;  %1065 = vmatmul.msk.f32.vlgmr.msra.gmra.mxu0 %vm414_vm3, %v497_v23  ;;  %v37_v22 = vld [vmem:[%s1502_s2 + $0x18] sm:$0xff]  ;;  %844 = vmatpush.msrb.mxu2 %v38_v21 }
 0x2b9   :  { %1064 = vmatmul.msk.f32.gmra.mxu3 %vm126_vm1, %v535_v26  ;;  %727 = vmatpush.msrb.mxu0 %v1112_v25  ;;  %v56_v21 = vld [vmem:[%s1504_s4 + $0x38] sm:$0xff] }
 0x2ba   :  { %845 = vmatpush.msrb.mxu2 %v37_v22 }
 0x2bb   :  { %728 = vmatpush.msrb.mxu0 %v1113_v27 }
 0x2c0   :  { %1066 = vmatmul.msk.f32.gmra.mxu0 %vm414_vm3, %v498_v30 }
 0x2c8   :  { %1073 = vmatmul.msk.f32.vlgmr.msrb.gmra.mxu0 %vm414_vm3, %v501_v32 }
 0x2dd   :  { %v486_v33 = vpop.xlane.xlu1 %485 }
 0x2de   :  { %1144 = vrcp.f32 %v486_v33  ;;  %v59_v33 = vld [vmem:[%s1504_s4 + $0x50] sm:$0xff] }
 0x2df   :  { %1146 = vrcp.f32 %v1193_v3 }
 0x2e4   :  { %v1145_v34 = vpop.eup %1144 }
 0x2e5   :  { %v502_v35 = vmul.f32 %v1145_v34, %v1133_v5 }
 0x2e7   :  { %1074 = vmatmul.msk.f32.gmra.mxu0 %vm414_vm3, %v502_v35 }
 0x314   :  { %v664_v37 = vpop.f32.mrf.mxu2 }
 0x315   :  { %1071 = vmatmul.msk.f32.vlgmr.msra.gmra.mxu3 %vm126_vm1, %v664_v37 }
 0x31c   :  { %v667_v39 = vpop.f32.mrf.mxu2 }
 0x31d   :  { %1072 = vmatmul.msk.f32.gmra.mxu3 %vm126_vm1, %v667_v39 }
 0x32f   :  { %v561_v45 = vpop.f32.mrf.mxu3 }
 0x330   :  { %v567_v50 = vadd.f32 %v561_v45, %v53_v47 }
 0x335   :  { %v598_v41 = vpop.f32.mrf.mxu0 }
 0x336   :  { %1067 = vmatmul.msk.f32.vlgmr.msra.gmra.mxu1 %vm126_vm1, %v598_v41 }
 0x33c   :  { %v564_v48 = vpop.f32.mrf.mxu3 }
 0x33d   :  { %v601_v42 = vpop.f32.mrf.mxu0  ;;  %v568_v59 = vadd.f32 %v564_v48, %v54_v58 }
 0x33e   :  { %1068 = vmatmul.msk.f32.gmra.mxu1 %vm126_vm1, %v601_v42 }
 0x345   :  { %v730_v43 = vpop.f32.mrf.mxu0 }
 0x346   :  { %1075 = vmatmul.msk.f32.vlgmr.msrb.gmra.mxu1 %vm126_vm1, %v730_v43 }
 0x364   :  { %v733_v44 = vpop.f32.mrf.mxu0 }
 0x365   :  { %1076 = vmatmul.msk.f32.gmra.mxu1 %vm126_vm1, %v733_v44 }
 0x398   :  { %v693_v52 = vpop.f32.mrf.mxu3 }
 0x3a0   :  { %v696_v61 = vpop.f32.mrf.mxu3 }
 0x3b3   :  { %v627_v46 = vpop.f32.mrf.mxu1 }
 0x3b4   :  { %v633_v51 = vadd.f32 %v627_v46, %v567_v50 }
 0x3b6   :  { %v699_v53 = vadd.f32 %v693_v52, %v633_v51  ;;  %v62_v51 = vld [vmem:[%s1504_s4 + $0x68] sm:$0xff] }
 0x3bb   :  { %v630_v49 = vpop.f32.mrf.mxu1 }
 0x3bc   :  { %v634_v60 = vadd.f32 %v630_v49, %v568_v59  ;;  %v60_v49 = vld [vmem:[%s1504_s4 + $0x58] sm:$0xff] }
 0x3be   :  { %v700_v62 = vadd.f32 %v696_v61, %v634_v60  ;;  %v48_v60 = vld [vmem:[%s1503_s3 + $0x38] sm:$0xff] }
 0x3bf   :  { %956 = vmatpush.msrb.mxu3 %v48_v60 }
 0x3c3   :  { %v759_v54 = vpop.f32.mrf.mxu1 }
 0x3c4   :  { %v765_v55 = vadd.f32 %v759_v54, %v699_v53  ;;  %v55_v54 = vld [vmem:[%s1504_s4 + $0x30] sm:$0xff] }
 0x3c6   :  { %v767_v56 = vadd.f32 %v765_v55, %v1254_v8  ;;  %v1147_v8 = vpop.eup %1146 }
 0x3c7   :  { %v776_v4 = vmul.f32 32.0, %v1147_v8  ;;  %vm780_vm11 = vweird.f32 %v1147_v8 }
 0x3c8   :  { %v769_v57 = vsel %vm67_vm0, %v767_v56, 0.0 }
 0x3c9   :  { %770 = vadd.xlane.f32.xlu0 %v769_v57  ;;  %v777_v5 = vsub.f32 1.0, %v776_v4  ;;  %v45_v4 = vld [vmem:[%s1503_s3 + $0x20] sm:$0xff] }
 0x3cb   :  { %v778_v6 = vmul.f32 %v1147_v8, %v777_v5 }
 0x3cd   :  { %v779_v7 = vadd.f32 %v1147_v8, %v778_v6 }
 0x3cf   :  { %v1387_v9 = vsel %vm780_vm11, %v1147_v8, %v779_v7  ;;  %v44_v7 = vld [vmem:[%s1503_s3 + $0x18] sm:$0xff] }
 0x3e2   :  { %v762_v63 = vpop.f32.mrf.mxu1 }
 0x3e3   :  { %v766_v0 = vadd.f32 %v762_v63, %v700_v62  ;;  %v47_v63 = vld [vmem:[%s1503_s3 + $0x30] sm:$0xff] }
 0x3e4   :  { %957 = vmatpush.msrb.mxu3 %v47_v63 }
 0x3e5   :  { %v768_v1 = vadd.f32 %v766_v0, %v1268_v11 }
 0x3e7   :  { %v772_v2 = vsel %vm67_vm0, %v768_v1, 0.0 }
 0x3e8   :  { %773 = vadd.xlane.f32.xlu2 %v772_v2  ;;  %v46_v2 = vld [vmem:[%s1503_s3 + $0x28] sm:$0xff] }
 0x3e9   :  { %958 = vmatpush.msrb.mxu3 %v46_v2 }
 0x3eb   :  { %959 = vmatpush.msrb.mxu3 %v45_v4 }
 0x3ed   :  { %960 = vmatpush.msrb.mxu3 %v44_v7 }
 0x43c   :  { %v771_v10 = vpop.xlane.xlu0 %770 }
 0x43d   :  { %v782_v12 = vmul.f32 %v1387_v9, %v771_v10 }
 0x43f   :  { %v784_v13 = vsub.f32 %v767_v56, %v782_v12  ;;  %v43_v12 = vld [vmem:[%s1503_s3 + $0x10] sm:$0xff] }
 0x440   :  { %961 = vmatpush.msrb.mxu3 %v43_v12 }
 0x441   :  { %v786_v24 = vmul.f32 %v784_v13, %v784_v13 }
 0x443   :  { %v788_v11 = vsel %vm67_vm0, %v786_v24, 0.0 }
 0x444   :  { %789 = vadd.xlane.f32.xlu1 %v788_v11  ;;  %v42_v11 = vld [vmem:[%s1503_s3 + $0x8] sm:$0xff] }
 0x445   :  { %962 = vmatpush.msrb.mxu3 %v42_v11 }
 0x45b   :  { %v774_v14 = vpop.xlane.xlu2 %773 }
 0x45c   :  { %v783_v15 = vmul.f32 %v1387_v9, %v774_v14 }
 0x45e   :  { %v785_v16 = vsub.f32 %v768_v1, %v783_v15  ;;  %v41_v15 = vld [vmem:[%s1503_s3] sm:$0xff] }
 0x45f   :  { %963 = vmatpush.msrb.mxu3 %v41_v15 }
 0x460   :  { %v787_v17 = vmul.f32 %v785_v16, %v785_v16 }
 0x462   :  { %v791_v18 = vsel %vm67_vm0, %v787_v17, 0.0 }
 0x463   :  { %792 = vadd.xlane.f32.xlu2 %v791_v18 }
 0x4b7   :  { %v790_v23 = vpop.xlane.xlu1 %789 }
 0x4b8   :  { %v794_v25 = vmul.f32 %v790_v23, %v1387_v9 }
 0x4ba   :  { %v796_v26 = vadd.f32 1e-05, %v794_v25 }
 0x4bc   :  { %1148 = vrsqrt.f32 %v796_v26  ;;  %vm804_vm13 = vweird.f32 %v796_v26 }
 0x4c2   :  { %v1149_v27 = vpop.eup %1148 }
 0x4c3   :  { %v799_v28 = vmul.f32 %v1149_v27, %v796_v26  ;;  %vm805_vm12 = vweird.f32 %v1149_v27 }
 0x4c4   :  { %vm806_vm14 = vmor %vm804_vm13, %vm805_vm12 }
 0x4c5   :  { %v800_v29 = vmul.f32 %v1149_v27, %v799_v28 }
 0x4c7   :  { %v801_v30 = vmul.f32 0.5, %v800_v29 }
 0x4c9   :  { %v802_v31 = vsub.f32 1.5, %v801_v30 }
 0x4cb   :  { %v803_v32 = vmul.f32 %v1149_v27, %v802_v31 }
 0x4cd   :  { %v807_v34 = vsel %vm806_vm14, %v1149_v27, %v803_v32 }
 0x4ce   :  { %v818_v35 = vmul.f32 %v807_v34, %v784_v13 }
 0x4d0   :  { %v820_v37 = vmul.f32 %v818_v35, %v59_v33 }
 0x4d2   :  { %v1412_v38 = vadd.f32 %v820_v37, %v61_v36 }
 0x4d4   :  { %1077 = vmatmul.msk.f32.vlgmr.msrb.gmra.mxu2 %vm67_vm0, %v1412_v38 }
 0x4d6   :  { %v793_v39 = vpop.xlane.xlu2 %792 }
 0x4d7   :  { %v795_v40 = vmul.f32 %v793_v39, %v1387_v9 }
 0x4d9   :  { %v797_v41 = vadd.f32 1e-05, %v795_v40 }
 0x4db   :  { %1150 = vrsqrt.f32 %v797_v41  ;;  %vm814_vm1 = vweird.f32 %v797_v41 }
 0x4e1   :  { %v1151_v42 = vpop.eup %1150 }
 0x4e2   :  { %v809_v43 = vmul.f32 %v1151_v42, %v797_v41  ;;  %vm815_vm15 = vweird.f32 %v1151_v42 }
 0x4e3   :  { %vm816_vm2 = vmor %vm814_vm1, %vm815_vm15 }
 0x4e4   :  { %v810_v44 = vmul.f32 %v1151_v42, %v809_v43 }
 0x4e6   :  { %v811_v45 = vmul.f32 0.5, %v810_v44 }
 0x4e8   :  { %v812_v46 = vsub.f32 1.5, %v811_v45 }
 0x4ea   :  { %v813_v47 = vmul.f32 %v1151_v42, %v812_v46 }
 0x4ec   :  { %v817_v48 = vsel %vm816_vm2, %v1151_v42, %v813_v47 }
 0x4ed   :  { %v819_v50 = vmul.f32 %v817_v48, %v785_v16 }
 0x4ef   :  { %v821_v52 = vmul.f32 %v819_v50, %v60_v49 }
 0x4f1   :  { %v1423_v53 = vadd.f32 %v821_v52, %v62_v51 }
 0x4f3   :  { %1078 = vmatmul.msk.f32.gmra.mxu2 %vm67_vm0, %v1423_v53 }
 0x557   :  { %v847_v55 = vpop.f32.mrf.mxu2 }
 0x558   :  { %v1430_v56 = vadd.f32 %v847_v55, %v55_v54 }
 0x55a   :  { %v855_v57 = vmul.f32 0.70710677, %v1430_v56  ;;  %v853_v55 = vmul.f32 0.5, %v1430_v56 }
 0x55c   :  { %v857_v58 = vmul.f32 %v855_v57, %v855_v57 }
 0x55e   :  { %v858_v59 = vmin.f32 %v857_v58, 16.0 }
 0x560   :  { %v859_v61 = vmul.f32 2.1237322e-06, %v858_v59  ;;  %v870_v62 = vmul.f32 3.8918573e-05, %v858_v59 }
 0x562   :  { %v860_v0 = vadd.f32 0.00028619796, %v859_v61  ;;  %v871_v1 = vadd.f32 0.001143296, %v870_v62 }
 0x564   :  { %v861_v3 = vmul.f32 %v860_v0, %v858_v59  ;;  %v872_v8 = vmul.f32 %v871_v1, %v858_v59 }
 0x566   :  { %v862_v5 = vadd.f32 0.0036580483, %v861_v3  ;;  %v873_v6 = vadd.f32 0.014752088, %v872_v8 }
 0x568   :  { %v874_v10 = vmul.f32 %v873_v6, %v858_v59  ;;  %v863_v13 = vmul.f32 %v862_v5, %v858_v59 }
 0x56a   :  { %v875_v24 = vadd.f32 0.112945676, %v874_v10  ;;  %v864_v16 = vadd.f32 0.05243302, %v863_v13 }
 0x56c   :  { %v876_v14 = vmul.f32 %v875_v24, %v858_v59  ;;  %v865_v19 = vmul.f32 %v864_v16, %v858_v59 }
 0x56e   :  { %v877_v17 = vadd.f32 0.4994258, %v876_v14  ;;  %v866_v22 = vadd.f32 0.18741608, %v865_v19 }
 0x570   :  { %v878_v18 = vmul.f32 %v877_v17, %v858_v59  ;;  %v867_v28 = vmul.f32 %v866_v22, %v858_v59 }
 0x572   :  { %v879_v20 = vadd.f32 1.0, %v878_v18  ;;  %v868_v33 = vadd.f32 1.1283791, %v867_v28  ;;  %v58_v28 = vld [vmem:[%s1504_s4 + $0x48] sm:$0xff] }
 0x574   :  { %1152 = vrcp.f32 %v879_v20  ;;  %v889_v34 = vand.u32 2147483647, %v879_v20  ;;  %v891_v35 = vand.u32 2147483648, %v879_v20  ;;  %vm885_vm4 = vweird.f32 %v879_v20 }
 0x575   :  { %v869_v43 = vmul.f32 %v868_v33, %v855_v57 }
 0x576   :  { %v850_v23 = vpop.f32.mrf.mxu2  ;;  %v892_v44 = vor.u32 1.1754944e-38, %v891_v35  ;;  %vm890_vm6 = vcmp.eq.f32.partialorder %v889_v34, 8.507059e+37 }
 0x577   :  { %v1460_v25 = vadd.f32 %v850_v23, %v56_v21  ;;  %v57_v21 = vld [vmem:[%s1504_s4 + $0x40] sm:$0xff] }
 0x579   :  { %v856_v26 = vmul.f32 0.70710677, %v1460_v25  ;;  %v854_v18 = vmul.f32 0.5, %v1460_v25 }
 0x57a   :  { %v1153_v27 = vpop.eup %1152 }
 0x57b   :  { %v881_v29 = vmul.f32 %v1153_v27, %v879_v20  ;;  %v897_v30 = vmul.f32 %v856_v26, %v856_v26  ;;  %vm886_vm3 = vweird.f32 %v1153_v27 }
 0x57c   :  { %vm887_vm5 = vmor %vm885_vm4, %vm886_vm3 }
 0x57d   :  { %v882_v31 = vsub.f32 1.0, %v881_v29  ;;  %v898_v32 = vmin.f32 %v897_v30, 16.0 }
 0x57f   :  { %v883_v36 = vmul.f32 %v1153_v27, %v882_v31  ;;  %v899_v37 = vmul.f32 2.1237322e-06, %v898_v32  ;;  %v910_v39 = vmul.f32 3.8918573e-05, %v898_v32 }
 0x581   :  { %v884_v40 = vadd.f32 %v1153_v27, %v883_v36  ;;  %v900_v41 = vadd.f32 0.00028619796, %v899_v37  ;;  %v911_v42 = vadd.f32 0.001143296, %v910_v39 }
 0x583   :  { %v888_v45 = vsel %vm887_vm5, %v1153_v27, %v884_v40  ;;  %v901_v46 = vmul.f32 %v900_v41, %v898_v32  ;;  %v912_v47 = vmul.f32 %v911_v42, %v898_v32 }
 0x584   :  { %v893_v48 = vsel %vm890_vm6, %v892_v44, %v888_v45 }
 0x585   :  { %v894_v49 = vmul.f32 %v893_v48, %v869_v43  ;;  %v913_v50 = vadd.f32 0.014752088, %v912_v47  ;;  %v902_v51 = vadd.f32 0.0036580483, %v901_v46 }
 0x587   :  { %v1079_v52 = vclamps-f32 %v894_v49, 1.0  ;;  %v914_v54 = vmul.f32 %v913_v50, %v898_v32  ;;  %v903_v60 = vmul.f32 %v902_v51, %v898_v32  ;;  %v63_v50 = vld [vmem:[%s1504_s4 + $0x70] sm:$0xff] }
 0x589   :  { %v937_v58 = vadd.f32 1.0, %v1079_v52  ;;  %v915_v59 = vadd.f32 0.112945676, %v914_v54  ;;  %v904_v63 = vadd.f32 0.05243302, %v903_v60  ;;  %v65_v54 = vld [vmem:[%s1504_s4 + $0x80] sm:$0xff] }
 0x58b   :  { %v939_v61 = vmul.f32 %v937_v58, %v853_v55  ;;  %v916_v57 = vmul.f32 %v915_v59, %v898_v32  ;;  %v905_v2 = vmul.f32 %v904_v63, %v898_v32 }
 0x58d   :  { %v917_v62 = vadd.f32 0.4994258, %v916_v57  ;;  %1081 = vmatmul.msk.f32.vlgmr.msrb.gmra.mxu3 %vm941_vm7, %v939_v61  ;;  %v906_v3 = vadd.f32 0.18741608, %v905_v2 }
 0x58f   :  { %v918_v0 = vmul.f32 %v917_v62, %v898_v32  ;;  %v907_v4 = vmul.f32 %v906_v3, %v898_v32  ;;  %v64_v3 = vld [vmem:[%s1504_s4 + $0x78] sm:$0xff] }
 0x591   :  { %v919_v1 = vadd.f32 1.0, %v918_v0  ;;  %v908_v7 = vadd.f32 1.1283791, %v907_v4 }
 0x593   :  { %1154 = vrcp.f32 %v919_v1  ;;  %v931_v56 = vand.u32 2147483648, %v919_v1  ;;  %v929_v12 = vand.u32 2147483647, %v919_v1  ;;  %vm925_vm9 = vweird.f32 %v919_v1 }
 0x594   :  { %v909_v11 = vmul.f32 %v908_v7, %v856_v26 }
 0x595   :  { %v932_v24 = vor.u32 1.1754944e-38, %v931_v56  ;;  %vm930_vm11 = vcmp.eq.f32.partialorder %v929_v12, 8.507059e+37 }
 0x599   :  { %v1155_v8 = vpop.eup %1154 }
 0x59a   :  { %v921_v5 = vmul.f32 %v1155_v8, %v919_v1  ;;  %vm926_vm8 = vweird.f32 %v1155_v8 }
 0x59b   :  { %vm927_vm10 = vmor %vm925_vm9, %vm926_vm8 }
 0x59c   :  { %v922_v6 = vsub.f32 1.0, %v921_v5 }
 0x59e   :  { %v923_v10 = vmul.f32 %v1155_v8, %v922_v6 }
 0x5a0   :  { %v924_v13 = vadd.f32 %v1155_v8, %v923_v10 }
 0x5a2   :  { %v928_v14 = vsel %vm927_vm10, %v1155_v8, %v924_v13 }
 0x5a3   :  { %v933_v15 = vsel %vm930_vm11, %v932_v24, %v928_v14 }
 0x5a4   :  { %v934_v16 = vmul.f32 %v933_v15, %v909_v11 }
 0x5a6   :  { %v1080_v17 = vclamps-f32 %v934_v16, 1.0 }
 0x5a8   :  { %v938_v19 = vadd.f32 1.0, %v1080_v17 }
 0x5aa   :  { %v940_v20 = vmul.f32 %v938_v19, %v854_v18 }
 0x5ac   :  { %1082 = vmatmul.msk.f32.gmra.mxu3 %vm941_vm7, %v940_v20 }
 0x610   :  { %v965_v22 = vpop.f32.mrf.mxu3 }
 0x611   :  { %v966_v23 = vadd.f32 %v965_v22, %v57_v21 }
 0x613   :  { %v971_v27 = vadd.f32 %v966_v23, %v1412_v38 }
 0x615   :  { %v973_v26 = vsel %vm67_vm0, %v971_v27, 0.0 }
 0x616   :  { %974 = vadd.xlane.f32.xlu1 %v973_v26 }
 0x62f   :  { %v968_v25 = vpop.f32.mrf.mxu3 }
 0x630   :  { %v969_v29 = vadd.f32 %v968_v25, %v58_v28 }
 0x632   :  { %v972_v30 = vadd.f32 %v969_v29, %v1423_v53 }
 0x634   :  { %v976_v31 = vsel %vm67_vm0, %v972_v30, 0.0 }
 0x635   :  { %977 = vadd.xlane.f32.xlu2 %v976_v31 }
 0x689   :  { %v975_v32 = vpop.xlane.xlu1 %974 }
 0x68a   :  { %v979_v33 = vmul.f32 %v975_v32, %v1387_v9 }
 0x68c   :  { %v981_v34 = vsub.f32 %v971_v27, %v979_v33 }
 0x68e   :  { %v983_v35 = vmul.f32 %v981_v34, %v981_v34 }
 0x690   :  { %v985_v38 = vsel %vm67_vm0, %v983_v35, 0.0 }
 0x691   :  { %986 = vadd.xlane.f32.xlu1 %v985_v38 }
 0x6a8   :  { %v978_v36 = vpop.xlane.xlu2 %977 }
 0x6a9   :  { %v980_v37 = vmul.f32 %v978_v36, %v1387_v9 }
 0x6ab   :  { %v982_v39 = vsub.f32 %v972_v30, %v980_v37 }
 0x6ad   :  { %v984_v40 = vmul.f32 %v982_v39, %v982_v39 }
 0x6af   :  { %v988_v41 = vsel %vm67_vm0, %v984_v40, 0.0 }
 0x6b0   :  { %989 = vadd.xlane.f32.xlu0 %v988_v41 }
 0x704   :  { %v987_v53 = vpop.xlane.xlu1 %986 }
 0x705   :  { %v991_v42 = vmul.f32 %v987_v53, %v1387_v9 }
 0x707   :  { %v993_v43 = vadd.f32 1e-05, %v991_v42 }
 0x709   :  { %1156 = vrsqrt.f32 %v993_v43  ;;  %vm1001_vm13 = vweird.f32 %v993_v43 }
 0x70f   :  { %v1157_v44 = vpop.eup %1156 }
 0x710   :  { %v996_v45 = vmul.f32 %v1157_v44, %v993_v43  ;;  %vm1002_vm12 = vweird.f32 %v1157_v44 }
 0x711   :  { %vm1003_vm14 = vmor %vm1001_vm13, %vm1002_vm12 }
 0x712   :  { %v997_v46 = vmul.f32 %v1157_v44, %v996_v45 }
 0x714   :  { %v998_v47 = vmul.f32 0.5, %v997_v46 }
 0x716   :  { %v999_v48 = vsub.f32 1.5, %v998_v47 }
 0x718   :  { %v1000_v49 = vmul.f32 %v1157_v44, %v999_v48 }
 0x71a   :  { %v1004_v51 = vsel %vm1003_vm14, %v1157_v44, %v1000_v49 }
 0x71b   :  { %v1015_v52 = vmul.f32 %v1004_v51, %v981_v34 }
 0x71d   :  { %v1017_v55 = vmul.f32 %v1015_v52, %v63_v50 }
 0x71f   :  { %v1019_v58 = vadd.f32 %v1017_v55, %v65_v54 }
 0x721   :  { %1021 = vst.msk [vmem:[#allocation2] sm:$0xff] %vm67_vm0, %v1019_v58 }
 0x723   :  { %v990_v59 = vpop.xlane.xlu0 %989 }
 0x724   :  { %v992_v60 = vmul.f32 %v990_v59, %v1387_v9  ;;  %v66_v9 = vld [vmem:[%s1504_s4 + $0x88] sm:$0xff] }
 0x726   :  { %v994_v61 = vadd.f32 1e-05, %v992_v60 }
 0x728   :  { %1158 = vrsqrt.f32 %v994_v61  ;;  %vm1011_vm1 = vweird.f32 %v994_v61 }
 0x72e   :  { %v1159_v57 = vpop.eup %1158 }
 0x72f   :  { %v1006_v62 = vmul.f32 %v1159_v57, %v994_v61  ;;  %vm1012_vm15 = vweird.f32 %v1159_v57 }
 0x730   :  { %vm1013_vm2 = vmor %vm1011_vm1, %vm1012_vm15 }
 0x731   :  { %v1007_v63 = vmul.f32 %v1159_v57, %v1006_v62 }
 0x733   :  { %v1008_v0 = vmul.f32 0.5, %v1007_v63 }
 0x735   :  { %v1009_v1 = vsub.f32 1.5, %v1008_v0 }
 0x737   :  { %v1010_v2 = vmul.f32 %v1159_v57, %v1009_v1 }
 0x739   :  { %v1014_v8 = vsel %vm1013_vm2, %v1159_v57, %v1010_v2 }
 0x73a   :  { %v1016_v4 = vmul.f32 %v1014_v8, %v982_v39 }
 0x73c   :  { %v1018_v5 = vmul.f32 %v1016_v4, %v64_v3 }
 0x73e   :  { %v1020_v6 = vadd.f32 %v1018_v5, %v66_v9 }
 0x740   :  { %1022 = vst.msk [vmem:[#allocation2 + $0x8] sm:$0xff] %vm67_vm0, %v1020_v6 }
 0x741   :  { %1035 = dma.vmem_to_hbm [thread:$0]  %s1028_s7, 256, %s1030_s10, [#allocation3], %s1195_s13, %s1195_s13, %s1196_s14  }
 0x742   :  { %1184 = dma.done.wait [#allocation3], 256  }
 0x743   :  { %1185 = vsyncadd [#allocation3], 4294967040 }
 0x744   :  { %1040 = vsyncpa [#allocation3], 1 }

</bundles_post_ra>
